<compile_context>
chip_gen: v6e
topology: v6e:2x2x1
jax: 0.10.0
libtpu: 0.0.40
codegen_flags: <defaults>
</compile_context>

<pallas_src>
import functools

import jax
import jax.numpy as jnp
from jax.experimental import pallas as pl
from jax.experimental.pallas import tpu as pltpu


def _mha_kernel(xq_ref, xkv_ref, wq_ref, bq_ref, wk_ref, bk_ref, wv_ref,
                bv_ref, wp_ref, bp_ref, o_ref, k_sc, v_sc, *,
                heads: int, emb_size: int):
    """One (batch, q-tile) grid step.

    xq_ref : (1, tq, E)  query rows of this tile
    xkv_ref: (1, N,  E)  full sequence (source of K / V), constant over qi
    w{q,k,v}_ref: (H, E, d)  head-batched projection weights (host pre-split)
    b{q,k,v}_ref: (H, 1, d)
    wp_ref : (H, d, E)   head-batched output-projection weight
    bp_ref : (1, E)
    o_ref  : (1, tq, E)
    k_sc, v_sc: (H, N, d) VMEM scratch — K/V cached across q tiles of a batch
    """
    qi = pl.program_id(1)
    xq = xq_ref[0]                       # (tq, E) — keep operand dtype
    tq = xq.shape[0]
    n = xkv_ref.shape[1]
    in_dtype = xq.dtype

    # K / V projections: computed once per batch element (first q tile) and
    # cached in scratch; reused by all subsequent q tiles of this batch.
    @pl.when(qi == 0)
    def _():
        xkv = xkv_ref[0]                 # (N, E)
        xkv_b = jnp.broadcast_to(xkv, (heads, n, emb_size))
        k = jnp.einsum("hke,hed->hkd", xkv_b, wk_ref[...],
                       preferred_element_type=jnp.float32) + bk_ref[...]
        v = jnp.einsum("hke,hed->hkd", xkv_b, wv_ref[...],
                       preferred_element_type=jnp.float32) + bv_ref[...]
        k_sc[...] = k.astype(k_sc.dtype)
        v_sc[...] = v.astype(v_sc.dtype)

    # Head-batched Q projection: batched MXU contraction, f32 accumulation.
    xq_b = jnp.broadcast_to(xq, (heads, tq, emb_size))
    q = jnp.einsum("hqe,hed->hqd", xq_b, wq_ref[...],
                   preferred_element_type=jnp.float32) + bq_ref[...]

    # Attention scores for all heads at once; contraction over the per-head
    # feature dim in natural layout (no explicit kh.T transpose).
    s = jnp.einsum("hqd,hkd->hqk", q.astype(in_dtype), k_sc[...],
                   preferred_element_type=jnp.float32)          # (H, tq, N) f32

    # Module semantics: softmax over keys, THEN divide by sqrt(emb_size).
    #   softmax(s)/sqrt(E) == exp(s-m) * 1/(sum(exp(s-m)) * sqrt(E))
    # Fold the scale into the normalizer: one pass over the (H, tq, N) matrix.
    m = jnp.max(s, axis=-1, keepdims=True)
    e = jnp.exp(s - m)
    denom = jnp.sum(e, axis=-1, keepdims=True) * (emb_size ** 0.5)
    # approx=True would route this to the EUP, but exact keeps 1e-5 parity
    # with the f32 reference.
    p = e * pl.reciprocal(denom, approx=False)                  # (H, tq, N) f32
    # TODO(synk): training-mode dropout on `p` not implemented (eval only).

    out = jnp.einsum("hqk,hkd->hqd", p.astype(in_dtype), v_sc[...],
                     preferred_element_type=jnp.float32)        # (H, tq, d)

    # Output projection, decomposed per head and summed:
    #   concat_h(out_h) @ Wp == sum_h out_h @ Wp[h*d:(h+1)*d, :]
    yh = jnp.einsum("hqd,hde->hqe", out.astype(in_dtype), wp_ref[...],
                    preferred_element_type=jnp.float32)         # (H, tq, E)
    y = jnp.sum(yh, axis=0) + bp_ref[...]                       # (tq, E)
    o_ref[0] = y.astype(o_ref.dtype)


def _choose_q_tile(n: int) -> int:
    """Largest q-tile (≤256, multiple of 8) that divides the sequence length."""
    for t in (256, 128, 64, 32, 16, 8):
        if n % t == 0:
            return t
    return n  # awkward lengths: single full-sequence tile (still valid block)


def multi_head_attention(x, params, *, heads: int):
    """x: (B, N, E), any float dtype (f32 or bf16 operands; f32 accumulation).

    params: dict of (in, out)-layout (E, E) weights and (1, E) biases.
    """
    B, N, E = x.shape
    assert E % heads == 0
    d = E // heads

    # Host-side layout plumbing (free): split each Linear into head-batched
    # form so the kernel sees (H, E, d) / (H, d, E) weights directly.
    head_w = lambda w: w.reshape(E, heads, d).transpose(1, 0, 2)   # (H, E, d)
    head_b = lambda b: b.reshape(heads, 1, d)                      # (H, 1, d)
    wq3, bq3 = head_w(params["wq"]), head_b(params["bq"])
    wk3, bk3 = head_w(params["wk"]), head_b(params["bk"])
    wv3, bv3 = head_w(params["wv"]), head_b(params["bv"])
    wp3, bp = params["wp"].reshape(heads, d, E), params["bp"]

    tq = _choose_q_tile(N)
    qt = N // tq

    kernel = functools.partial(_mha_kernel, heads=heads, emb_size=E)

    # Weights / biases: full blocks, constant index map (loaded once, reused
    # across the whole grid).
    const = lambda arr: pl.BlockSpec(arr.shape, lambda b, qi: (0,) * arr.ndim)

    itemsize = x.dtype.itemsize
    param_bytes = sum(int(p.size) * p.dtype.itemsize for p in params.values())
    cost = pl.CostEstimate(
        flops=int(8 * B * N * E * E + 4 * B * N * N * E),
        transcendentals=int(B * heads * N * N),
        bytes_accessed=int(3 * B * N * E * itemsize + param_bytes),
    )

    return pl.pallas_call(
        kernel,
        out_shape=jax.ShapeDtypeStruct((B, N, E), x.dtype),
        grid=(B, qt),
        in_specs=[
            pl.BlockSpec((1, tq, E), lambda b, qi: (b, qi, 0)),  # query rows
            pl.BlockSpec((1, N, E), lambda b, qi: (b, 0, 0)),    # full seq (K/V)
            const(wq3), const(bq3),
            const(wk3), const(bk3),
            const(wv3), const(bv3),
            const(wp3), const(bp),
        ],
        out_specs=pl.BlockSpec((1, tq, E), lambda b, qi: (b, qi, 0)),
        scratch_shapes=[
            pltpu.VMEM((heads, N, d), x.dtype),   # cached K
            pltpu.VMEM((heads, N, d), x.dtype),   # cached V
        ],
        compiler_params=pltpu.CompilerParams(
            # batch axis megacore-sharded; q-tile axis carries the K/V scratch.
            dimension_semantics=("parallel", "arbitrary")),
        cost_estimate=cost,
    )(x, x, wq3, bq3, wk3, bk3, wv3, bv3, wp3, bp)


def _init_params(key, emb_size):
    """Deterministic parameter init. Weights stored as (in, out)."""
    ks = jax.random.split(key, 8)
    bound = 1.0 / (emb_size ** 0.5)
    u = lambda k, shape: jax.random.uniform(k, shape, jnp.float32, -bound, bound)
    return {
        "wq": u(ks[0], (emb_size, emb_size)), "bq": u(ks[1], (1, emb_size)),
        "wk": u(ks[2], (emb_size, emb_size)), "bk": u(ks[3], (1, emb_size)),
        "wv": u(ks[4], (emb_size, emb_size)), "bv": u(ks[5], (1, emb_size)),
        "wp": u(ks[6], (emb_size, emb_size)), "bp": u(ks[7], (1, emb_size)),
    }


def _reference(x, params, heads):
    """Pure-JAX reference mirroring the PyTorch forward exactly."""
    B, N, E = x.shape
    d = E // heads
    q = x @ params["wq"] + params["bq"]
    k = x @ params["wk"] + params["bk"]
    v = x @ params["wv"] + params["bv"]
    split = lambda t: t.reshape(B, N, heads, d).transpose(0, 2, 1, 3)  # b h n d
    q, k, v = split(q), split(k), split(v)
    s = jnp.einsum("bhqd,bhkd->bhqk", q, k)
    attn = jax.nn.softmax(s, axis=-1) / (E ** 0.5)
    out = jnp.einsum("bhal,bhlv->bhav", attn, v)
    out = out.transpose(0, 2, 1, 3).reshape(B, N, E)
    return out @ params["wp"] + params["bp"]


if __name__ == "__main__":
    B, N, E, H = 2, 8, 32, 4

    key = jax.random.PRNGKey(0)
    kx, kp = jax.random.split(key)
    x = jax.random.normal(kx, (B, N, E), dtype=jnp.float32)
    params = _init_params(kp, E)

    # f32 operands — exact parity with the pure-JAX reference.
    y = jax.block_until_ready(multi_head_attention(x, params, heads=H))
    y_ref = _reference(x, params, H)
    assert y.shape == (B, N, E)
    assert jnp.allclose(y, y_ref, atol=1e-5, rtol=1e-5), "f32 mismatch vs reference"

    # bf16 MXU operands (f32 accumulation, f32 softmax) — looser tolerance.
    x_bf = x.astype(jnp.bfloat16)
    params_bf = {k: v.astype(jnp.bfloat16) for k, v in params.items()}
    y_bf = jax.block_until_ready(multi_head_attention(x_bf, params_bf, heads=H))
    assert y_bf.shape == (B, N, E)
    assert jnp.allclose(y_bf.astype(jnp.float32), y_ref, atol=5e-2, rtol=5e-2), \
        "bf16 mismatch vs reference"

    # Longer sequence (multiple q tiles) — exercises the K/V scratch carry.
    N2 = 256
    x2 = jax.random.normal(jax.random.PRNGKey(1), (B, N2, E), dtype=jnp.float32)
    y2 = jax.block_until_ready(multi_head_attention(x2, params, heads=H))
    y2_ref = _reference(x2, params, H)
    assert jnp.allclose(y2, y2_ref, atol=1e-5, rtol=1e-5), \
        "multi-tile mismatch vs reference"

    print("KERNEL_OK")
</pallas_src>

<mosaic_0001>
module attributes {stable_mosaic.version = 11 : i64} {
  func.func @_mha_kernel(%arg0: i32, %arg1: i32, %arg2: memref<1x8x32xf32, #tpu.memory_space<vmem>>, %arg3: memref<1x8x32xf32, #tpu.memory_space<vmem>>, %arg4: memref<4x32x8xf32, #tpu.memory_space<vmem>>, %arg5: memref<4x1x8xf32, #tpu.memory_space<vmem>>, %arg6: memref<4x32x8xf32, #tpu.memory_space<vmem>>, %arg7: memref<4x1x8xf32, #tpu.memory_space<vmem>>, %arg8: memref<4x32x8xf32, #tpu.memory_space<vmem>>, %arg9: memref<4x1x8xf32, #tpu.memory_space<vmem>>, %arg10: memref<4x8x32xf32, #tpu.memory_space<vmem>>, %arg11: memref<1x32xf32, #tpu.memory_space<vmem>>, %arg12: memref<1x8x32xf32, #tpu.memory_space<vmem>>, %arg13: memref<4x8x8xf32, #tpu.memory_space<vmem>>, %arg14: memref<4x8x8xf32, #tpu.memory_space<vmem>>) attributes {dimension_semantics = [#tpu.dimension_semantics<parallel>, #tpu.dimension_semantics<arbitrary>], iteration_bounds = array<i64: 2, 1>, scalar_prefetch = 0 : i64, scratch_operands = 2 : i64, tpu.core_type = #tpu.core_type<tc>, window_params = [{transform_indices = @transform_0, window_bounds = array<i64: 1, 8, 32>}, {transform_indices = @transform_1, window_bounds = array<i64: 1, 8, 32>}, {pipeline_mode = #tpu.pipeline_mode<synchronous>, transform_indices = @transform_2, window_bounds = array<i64: 4, 32, 8>}, {pipeline_mode = #tpu.pipeline_mode<synchronous>, transform_indices = @transform_3, window_bounds = array<i64: 4, 1, 8>}, {pipeline_mode = #tpu.pipeline_mode<synchronous>, transform_indices = @transform_4, window_bounds = array<i64: 4, 32, 8>}, {pipeline_mode = #tpu.pipeline_mode<synchronous>, transform_indices = @transform_5, window_bounds = array<i64: 4, 1, 8>}, {pipeline_mode = #tpu.pipeline_mode<synchronous>, transform_indices = @transform_6, window_bounds = array<i64: 4, 32, 8>}, {pipeline_mode = #tpu.pipeline_mode<synchronous>, transform_indices = @transform_7, window_bounds = array<i64: 4, 1, 8>}, {pipeline_mode = #tpu.pipeline_mode<synchronous>, transform_indices = @transform_8, window_bounds = array<i64: 4, 8, 32>}, {pipeline_mode = #tpu.pipeline_mode<synchronous>, transform_indices = @transform_9, window_bounds = array<i64: 1, 32>}, {transform_indices = @transform_10, window_bounds = array<i64: 1, 8, 32>}]} {
    %c0 = arith.constant 0 : index
    %c0_0 = arith.constant 0 : index
    %c0_1 = arith.constant 0 : index
    %0 = vector.load %arg2[%c0, %c0_0, %c0_1] : memref<1x8x32xf32, #tpu.memory_space<vmem>>, vector<1x8x32xf32>
    %1 = vector.shape_cast %0 : vector<1x8x32xf32> to vector<8x32xf32>
    %c0_i32 = arith.constant 0 : i32
    %2 = arith.cmpi eq, %arg1, %c0_i32 : i32
    %3 = arith.extui %2 : i1 to i32
    %c0_i32_2 = arith.constant 0 : i32
    %4 = arith.cmpi ne, %3, %c0_i32_2 : i32
    scf.if %4 {
      %c0_30 = arith.constant 0 : index
      %c0_31 = arith.constant 0 : index
      %c0_32 = arith.constant 0 : index
      %37 = vector.load %arg3[%c0_30, %c0_31, %c0_32] : memref<1x8x32xf32, #tpu.memory_space<vmem>>, vector<1x8x32xf32>
      %38 = vector.shape_cast %37 : vector<1x8x32xf32> to vector<8x32xf32>
      %39 = vector.shape_cast %38 : vector<8x32xf32> to vector<1x8x32xf32>
      %40 = vector.broadcast %39 : vector<1x8x32xf32> to vector<4x8x32xf32>
      %c0_33 = arith.constant 0 : index
      %c0_34 = arith.constant 0 : index
      %c0_35 = arith.constant 0 : index
      %41 = vector.load %arg6[%c0_33, %c0_34, %c0_35] : memref<4x32x8xf32, #tpu.memory_space<vmem>>, vector<4x32x8xf32>
      "tpu.trace_start"() <{level = 10 : i32, message = "hke,hed->hkd"}> : () -> ()
      %cst_36 = arith.constant dense<0.000000e+00> : vector<4x8x8xf32>
      %42 = tpu.matmul %40, %41, %cst_36 {dimension_numbers = #tpu.dot_dimension_numbers<[2], [1], [1], [2], [0, 0, 0, 1, 1, 2], [0], [0]>} : vector<4x8x32xf32>, vector<4x32x8xf32>, vector<4x8x8xf32> -> vector<4x8x8xf32>
      "tpu.trace_stop"() : () -> ()
      %c0_37 = arith.constant 0 : index
      %c0_38 = arith.constant 0 : index
      %c0_39 = arith.constant 0 : index
      %43 = vector.load %arg7[%c0_37, %c0_38, %c0_39] : memref<4x1x8xf32, #tpu.memory_space<vmem>>, vector<4x1x8xf32>
      %44 = vector.broadcast %43 : vector<4x1x8xf32> to vector<4x8x8xf32>
      %45 = arith.addf %42, %44 : vector<4x8x8xf32>
      %c0_40 = arith.constant 0 : index
      %c0_41 = arith.constant 0 : index
      %c0_42 = arith.constant 0 : index
      %46 = vector.load %arg8[%c0_40, %c0_41, %c0_42] : memref<4x32x8xf32, #tpu.memory_space<vmem>>, vector<4x32x8xf32>
      "tpu.trace_start"() <{level = 10 : i32, message = "hke,hed->hkd"}> : () -> ()
      %cst_43 = arith.constant dense<0.000000e+00> : vector<4x8x8xf32>
      %47 = tpu.matmul %40, %46, %cst_43 {dimension_numbers = #tpu.dot_dimension_numbers<[2], [1], [1], [2], [0, 0, 0, 1, 1, 2], [0], [0]>} : vector<4x8x32xf32>, vector<4x32x8xf32>, vector<4x8x8xf32> -> vector<4x8x8xf32>
      "tpu.trace_stop"() : () -> ()
      %c0_44 = arith.constant 0 : index
      %c0_45 = arith.constant 0 : index
      %c0_46 = arith.constant 0 : index
      %48 = vector.load %arg9[%c0_44, %c0_45, %c0_46] : memref<4x1x8xf32, #tpu.memory_space<vmem>>, vector<4x1x8xf32>
      %49 = vector.broadcast %48 : vector<4x1x8xf32> to vector<4x8x8xf32>
      %50 = arith.addf %47, %49 : vector<4x8x8xf32>
      %c0_47 = arith.constant 0 : index
      %c0_48 = arith.constant 0 : index
      %c0_49 = arith.constant 0 : index
      %51 = vector.load %arg13[%c0_47, %c0_48, %c0_49] : memref<4x8x8xf32, #tpu.memory_space<vmem>>, vector<4x8x8xf32>
      tpu.vector_store %arg13[%c0_47, %c0_48, %c0_49], %45 {strides = array<i32>} : memref<4x8x8xf32, #tpu.memory_space<vmem>>, vector<4x8x8xf32>,
      %c0_50 = arith.constant 0 : index
      %c0_51 = arith.constant 0 : index
      %c0_52 = arith.constant 0 : index
      %52 = vector.load %arg14[%c0_50, %c0_51, %c0_52] : memref<4x8x8xf32, #tpu.memory_space<vmem>>, vector<4x8x8xf32>
      tpu.vector_store %arg14[%c0_50, %c0_51, %c0_52], %50 {strides = array<i32>} : memref<4x8x8xf32, #tpu.memory_space<vmem>>, vector<4x8x8xf32>,
    } else {
    }
    %5 = vector.shape_cast %1 : vector<8x32xf32> to vector<1x8x32xf32>
    %6 = vector.broadcast %5 : vector<1x8x32xf32> to vector<4x8x32xf32>
    %c0_3 = arith.constant 0 : index
    %c0_4 = arith.constant 0 : index
    %c0_5 = arith.constant 0 : index
    %7 = vector.load %arg4[%c0_3, %c0_4, %c0_5] : memref<4x32x8xf32, #tpu.memory_space<vmem>>, vector<4x32x8xf32>
    "tpu.trace_start"() <{level = 10 : i32, message = "hqe,hed->hqd"}> : () -> ()
    %cst = arith.constant dense<0.000000e+00> : vector<4x8x8xf32>
    %8 = tpu.matmul %6, %7, %cst {dimension_numbers = #tpu.dot_dimension_numbers<[2], [1], [1], [2], [0, 0, 0, 1, 1, 2], [0], [0]>} : vector<4x8x32xf32>, vector<4x32x8xf32>, vector<4x8x8xf32> -> vector<4x8x8xf32>
    "tpu.trace_stop"() : () -> ()
    %c0_6 = arith.constant 0 : index
    %c0_7 = arith.constant 0 : index
    %c0_8 = arith.constant 0 : index
    %9 = vector.load %arg5[%c0_6, %c0_7, %c0_8] : memref<4x1x8xf32, #tpu.memory_space<vmem>>, vector<4x1x8xf32>
    %10 = vector.broadcast %9 : vector<4x1x8xf32> to vector<4x8x8xf32>
    %11 = arith.addf %8, %10 : vector<4x8x8xf32>
    %c0_9 = arith.constant 0 : index
    %c0_10 = arith.constant 0 : index
    %c0_11 = arith.constant 0 : index
    %12 = vector.load %arg13[%c0_9, %c0_10, %c0_11] : memref<4x8x8xf32, #tpu.memory_space<vmem>>, vector<4x8x8xf32>
    "tpu.trace_start"() <{level = 10 : i32, message = "hqd,hkd->hqk"}> : () -> ()
    %cst_12 = arith.constant dense<0.000000e+00> : vector<4x8x8xf32>
    %13 = tpu.matmul %11, %12, %cst_12 {dimension_numbers = #tpu.dot_dimension_numbers<[2], [2], [1], [1], [0, 0, 0, 1, 1, 1], [0], [0]>} : vector<4x8x8xf32>, vector<4x8x8xf32>, vector<4x8x8xf32> -> vector<4x8x8xf32>
    "tpu.trace_stop"() : () -> ()
    %cst_13 = arith.constant dense<0xFF800000> : vector<4x8xf32>
    %14 = vector.multi_reduction <maximumf>, %13, %cst_13 [2] : vector<4x8x8xf32> to vector<4x8xf32>
    %15 = vector.shape_cast %14 : vector<4x8xf32> to vector<4x8x1xf32>
    %16 = vector.broadcast %15 : vector<4x8x1xf32> to vector<4x8x8xf32>
    %17 = arith.subf %13, %16 : vector<4x8x8xf32>
    %18 = math.exp %17 : vector<4x8x8xf32>
    %cst_14 = arith.constant dense<0.000000e+00> : vector<4x8xf32>
    %19 = vector.multi_reduction <add>, %18, %cst_14 [2] : vector<4x8x8xf32> to vector<4x8xf32>
    %20 = vector.shape_cast %19 : vector<4x8xf32> to vector<4x8x1xf32>
    %cst_15 = arith.constant 5.65685415 : f32
    %21 = vector.broadcast %cst_15 : f32 to vector<4x8x1xf32>
    %22 = arith.mulf %20, %21 : vector<4x8x1xf32>
    %23 = tpu.reciprocal %22 : vector<4x8x1xf32> -> vector<4x8x1xf32>
    %24 = vector.broadcast %23 : vector<4x8x1xf32> to vector<4x8x8xf32>
    %25 = arith.mulf %18, %24 : vector<4x8x8xf32>
    %c0_16 = arith.constant 0 : index
    %c0_17 = arith.constant 0 : index
    %c0_18 = arith.constant 0 : index
    %26 = vector.load %arg14[%c0_16, %c0_17, %c0_18] : memref<4x8x8xf32, #tpu.memory_space<vmem>>, vector<4x8x8xf32>
    "tpu.trace_start"() <{level = 10 : i32, message = "hqk,hkd->hqd"}> : () -> ()
    %cst_19 = arith.constant dense<0.000000e+00> : vector<4x8x8xf32>
    %27 = tpu.matmul %25, %26, %cst_19 {dimension_numbers = #tpu.dot_dimension_numbers<[2], [1], [1], [2], [0, 0, 0, 1, 1, 2], [0], [0]>} : vector<4x8x8xf32>, vector<4x8x8xf32>, vector<4x8x8xf32> -> vector<4x8x8xf32>
    "tpu.trace_stop"() : () -> ()
    %c0_20 = arith.constant 0 : index
    %c0_21 = arith.constant 0 : index
    %c0_22 = arith.constant 0 : index
    %28 = vector.load %arg10[%c0_20, %c0_21, %c0_22] : memref<4x8x32xf32, #tpu.memory_space<vmem>>, vector<4x8x32xf32>
    "tpu.trace_start"() <{level = 10 : i32, message = "hqd,hde->hqe"}> : () -> ()
    %cst_23 = arith.constant dense<0.000000e+00> : vector<4x8x32xf32>
    %29 = tpu.matmul %27, %28, %cst_23 {dimension_numbers = #tpu.dot_dimension_numbers<[2], [1], [1], [2], [0, 0, 0, 1, 1, 2], [0], [0]>} : vector<4x8x8xf32>, vector<4x8x32xf32>, vector<4x8x32xf32> -> vector<4x8x32xf32>
    "tpu.trace_stop"() : () -> ()
    %cst_24 = arith.constant dense<0.000000e+00> : vector<8x32xf32>
    %30 = vector.multi_reduction <add>, %29, %cst_24 [0] : vector<4x8x32xf32> to vector<8x32xf32>
    %c0_25 = arith.constant 0 : index
    %c0_26 = arith.constant 0 : index
    %31 = vector.load %arg11[%c0_25, %c0_26] : memref<1x32xf32, #tpu.memory_space<vmem>>, vector<1x32xf32>
    %32 = vector.broadcast %31 : vector<1x32xf32> to vector<8x32xf32>
    %33 = arith.addf %30, %32 : vector<8x32xf32>
    %c0_27 = arith.constant 0 : index
    %c0_28 = arith.constant 0 : index
    %c0_29 = arith.constant 0 : index
    %34 = vector.load %arg12[%c0_27, %c0_28, %c0_29] : memref<1x8x32xf32, #tpu.memory_space<vmem>>, vector<1x8x32xf32>
    %35 = vector.shape_cast %34 : vector<1x8x32xf32> to vector<8x32xf32>
    %36 = vector.shape_cast %33 : vector<8x32xf32> to vector<1x8x32xf32>
    tpu.vector_store %arg12[%c0_27, %c0_28, %c0_29], %36 {strides = array<i32>} : memref<1x8x32xf32, #tpu.memory_space<vmem>>, vector<1x8x32xf32>,
    return
  }
  func.func @transform_0(%arg0: i32, %arg1: i32) -> (i32, i32, i32) {
    %c0_i32 = arith.constant 0 : i32
    %c0_i32_0 = arith.constant 0 : i32
    return %arg0, %arg1, %c0_i32 : i32, i32, i32
  }
  func.func @transform_1(%arg0: i32, %arg1: i32) -> (i32, i32, i32) {
    %c0_i32 = arith.constant 0 : i32
    %c0_i32_0 = arith.constant 0 : i32
    %c0_i32_1 = arith.constant 0 : i32
    return %arg0, %c0_i32, %c0_i32_0 : i32, i32, i32
  }
  func.func @transform_2(%arg0: i32, %arg1: i32) -> (i32, i32, i32) {
    %c0_i32 = arith.constant 0 : i32
    %c0_i32_0 = arith.constant 0 : i32
    %c0_i32_1 = arith.constant 0 : i32
    %c0_i32_2 = arith.constant 0 : i32
    return %c0_i32, %c0_i32_0, %c0_i32_1 : i32, i32, i32
  }
  func.func @transform_3(%arg0: i32, %arg1: i32) -> (i32, i32, i32) {
    %c0_i32 = arith.constant 0 : i32
    %c0_i32_0 = arith.constant 0 : i32
    %c0_i32_1 = arith.constant 0 : i32
    %c0_i32_2 = arith.constant 0 : i32
    return %c0_i32, %c0_i32_0, %c0_i32_1 : i32, i32, i32
  }
  func.func @transform_4(%arg0: i32, %arg1: i32) -> (i32, i32, i32) {
    %c0_i32 = arith.constant 0 : i32
    %c0_i32_0 = arith.constant 0 : i32
    %c0_i32_1 = arith.constant 0 : i32
    %c0_i32_2 = arith.constant 0 : i32
    return %c0_i32, %c0_i32_0, %c0_i32_1 : i32, i32, i32
  }
  func.func @transform_5(%arg0: i32, %arg1: i32) -> (i32, i32, i32) {
    %c0_i32 = arith.constant 0 : i32
    %c0_i32_0 = arith.constant 0 : i32
    %c0_i32_1 = arith.constant 0 : i32
    %c0_i32_2 = arith.constant 0 : i32
    return %c0_i32, %c0_i32_0, %c0_i32_1 : i32, i32, i32
  }
  func.func @transform_6(%arg0: i32, %arg1: i32) -> (i32, i32, i32) {
    %c0_i32 = arith.constant 0 : i32
    %c0_i32_0 = arith.constant 0 : i32
    %c0_i32_1 = arith.constant 0 : i32
    %c0_i32_2 = arith.constant 0 : i32
    return %c0_i32, %c0_i32_0, %c0_i32_1 : i32, i32, i32
  }
  func.func @transform_7(%arg0: i32, %arg1: i32) -> (i32, i32, i32) {
    %c0_i32 = arith.constant 0 : i32
    %c0_i32_0 = arith.constant 0 : i32
    %c0_i32_1 = arith.constant 0 : i32
    %c0_i32_2 = arith.constant 0 : i32
    return %c0_i32, %c0_i32_0, %c0_i32_1 : i32, i32, i32
  }
  func.func @transform_8(%arg0: i32, %arg1: i32) -> (i32, i32, i32) {
    %c0_i32 = arith.constant 0 : i32
    %c0_i32_0 = arith.constant 0 : i32
    %c0_i32_1 = arith.constant 0 : i32
    %c0_i32_2 = arith.constant 0 : i32
    return %c0_i32, %c0_i32_0, %c0_i32_1 : i32, i32, i32
  }
  func.func @transform_9(%arg0: i32, %arg1: i32) -> (i32, i32) {
    %c0_i32 = arith.constant 0 : i32
    %c0_i32_0 = arith.constant 0 : i32
    %c0_i32_1 = arith.constant 0 : i32
    return %c0_i32, %c0_i32_0 : i32, i32
  }
  func.func @transform_10(%arg0: i32, %arg1: i32) -> (i32, i32, i32) {
    %c0_i32 = arith.constant 0 : i32
    %c0_i32_0 = arith.constant 0 : i32
    return %arg0, %arg1, %c0_i32 : i32, i32, i32
  }
}

</mosaic_0001>

<bundles_post_ra>
// kernel: tpu_custom_call.1
= control target key start
LH: loop header
LB: loop body
LE: loop exit
PB: predicated region body
PF: predicated region fallthrough
CT: control target
= control target key end

     0   :  { %s3464_s0 = inlined_call_operand.vmem [shape: f32[2,8,32], index: 0, kind: input, shape index: {}]   ;;  %s3465_s1 = inlined_call_operand.vmem [shape: f32[2,8,32], index: 1, kind: input, shape index: {}]   ;;  %s3466_s2 = inlined_call_operand.vmem [shape: f32[4,32,8], index: 2, kind: input, shape index: {}]   ;;  %s3467_s3 = inlined_call_operand.vmem [shape: f32[4,1,8], index: 3, kind: input, shape index: {}]   ;;  %s3468_s4 = inlined_call_operand.vmem [shape: f32[4,32,8], index: 4, kind: input, shape index: {}]   ;;  %s3469_s5 = inlined_call_operand.vmem [shape: f32[4,1,8], index: 5, kind: input, shape index: {}]   ;;  %s3470_s6 = inlined_call_operand.vmem [shape: f32[4,32,8], index: 6, kind: input, shape index: {}]   ;;  %s3471_s7 = inlined_call_operand.vmem [shape: f32[4,1,8], index: 7, kind: input, shape index: {}]   ;;  %s3472_s8 = inlined_call_operand.vmem [shape: f32[4,8,32], index: 8, kind: input, shape index: {}]   ;;  %s3473_s9 = inlined_call_operand.vmem [shape: f32[1,32], index: 9, kind: input, shape index: {}]   ;;  %s3474_s10 = inlined_call_operand.hbm [shape: f32[2,8,32], index: 10, kind: output, shape index: {}]  }
   0x1   :  { %3475 = sst [smem:[#allocation7_spill]] %s3464_s0 }
   0x2   :  { %3476 = sst [smem:[#allocation8_spill]] %s3465_s1 }
   0x3   :  { %15 = vsyncpa [#allocation5], 0 }
   0x4   :  { %17 = vsyncpa [#allocation5 + $0x1], 0  ;;  %s2993_s13 = smov 0   ;;  %s2995_s14 = smov 0  }
   0x5   :  { %s2997_s15 = smov 0   ;;  %s2999_s16 = smov 0  }
   0x6   :  { %s3001_s17 = smov 0   ;;  %s3003_s18 = smov 0  }
   0x7 LB: > { %s2455_s19 = sadd.s32 4294967295, %s2933_s18   ;;  %s2456_s20 = sadd.s32 4294967294, %s2933_s18   ;;  %s2933_s18 = sphi %s3003_s18, %s23_s18   ;;  %s2929_s17 = sphi %s3001_s17, %s3485_s17   ;;  %s2925_s16 = sphi %s2999_s16, %s3484_s16   ;;  %s2921_s15 = sphi %s2997_s15, %s3483_s15   ;;  %s2917_s14 = sphi %s2995_s14, %s3482_s14   ;;  %s2913_s13 = sphi %s2993_s13, %s3481_s13  }
   0x8   : > { %s35_s21 = sadd.s32 1, %s2929_s17  ;;  %s266_s22 = sadd.s32 1, %s2921_s15 }
   0x9   : > { %p37_p0 = scmp.ge.s32.totalorder %s35_s21, 2  ;;  %p276_p1 = scmp.ne.s32.totalorder %s2921_s15, %s2917_s14 }
   0xa   : > { %p277_p2 = scmp.eq.s32.totalorder %s2455_s19, 1  ;;  %p282_p3 = scmp.ne.s32.totalorder %s2917_s14, %s2913_s13 }
   0xb   : > { %s3487_s21 = smov (%p37_p0, %s35_s21), 0  ;;  %p283_p5 = scmp.eq.s32.totalorder %s2456_s20, 1 }
   0xc   : > { %p3033_p4 = por %p277_p2, %p276_p1  ;;  %s261_s24 = ssub.s32 %s2929_s17, %s3487_s21 }
   0xd   : > { %p2459_p6 = scmp.ge.s32.totalorder %s2933_s18, 1  ;;  %p264_p7 = scmp.eq.s32.totalorder %s261_s24, 0 }
   0xe   : > { %p3040_p8 = por %p283_p5, %p282_p3  ;;  %p342_p9 = scmp.lt.s32.totalorder %s2933_s18, 3 }
   0xf   : > { %s3046_s26 = scalar_select %p264_p7, %s2921_s15, %s266_s22  }
  0x10   : > { %p343_p10 = pnand %p2459_p6, %p342_p9 }
  0x11   : > { %p386_p11 = scmp.lt.s32.totalorder (!%p343_p10), %s2925_s16, 1  ;;  %s3479_s1 = sld [smem:[#allocation8_spill]] (!%p343_p10) }
  0x12   : > { %346 = sbr.rel (%p343_p10) target bundleno = 1193 (0x4a9), region = 60  ;;  %s3480_s0 = sld [smem:[#allocation7_spill]] (!%p343_p10) }
  0x13   : > { %s383_s19 = sand.u32 (!%p343_p10), 1, %s2917_s14   ;;  %s2505_s28 = sshll.u32 (!%p343_p10), %s2925_s16, 7 }
  0x14   : > { %s2460_s20 = sshll.u32 (!%p343_p10), %s383_s19, 3  ;;  %s2358_s12 = scalar_lea.sflag (!%p343_p10), [#allocation5], %s383_s19 }
  0x15   : > { %s385_s29 = scalar_lea.vmem (!%p343_p10), [#allocation4], %s2460_s20 }
  0x16   : > { %s2372_s11 = sshll.u32 (!%p343_p10), %s385_s29, 4  ;;  %s2373_s11 = int_to_ptr.vmem [resolvable:$true] %s2372_s11 }
  0x17   : > { %v406_v0 = vld [vmem:[%s3468_s4 + $0x18] sm:$0xff]  ;;  %v2935_v2 = vmov 0.0   ;;  %v405_v3 = vld [vmem:[%s3468_s4 + $0x10] sm:$0xff]  ;;  %s3064_s22 = scalar_select %p386_p11, %s2925_s16, 1  ;;  %v404_v5 = vld [vmem:[%s3468_s4 + $0x8] sm:$0xff]  ;;  %vm447_vm0 = vcmask 261120  }
  0x18   : > { %v410_v1 = vld [vmem:[%s3468_s4 + $0x38] sm:$0xff]  ;;  %2592 = vmatprep.subr.mxu0 %v2935_v2  ;;  %2603 = vmatprep.subr.mxu1 %v2935_v2  ;;  %v409_v4 = vld [vmem:[%s3468_s4 + $0x30] sm:$0xff]  ;;  %v408_v6 = vld [vmem:[%s3468_s4 + $0x28] sm:$0xff]  ;;  %vm2936_vm1 = vmmov 0   ;;  %vm1055_vm2 = vcmask 64512  }
  0x19   : > { %2593 = vmatpush3.msra.mxu0 %v406_v0  ;;  %2604 = vmatpush3.msra.mxu1 %v410_v1  ;;  %s2461_s30 = sshll.u32 %s3064_s22, 3  ;;  %v403_v7 = vld [vmem:[%s3468_s4] sm:$0xff]  ;;  %v414_v10 = vld [vmem:[%s3468_s4 + $0x58] sm:$0xff]  ;;  %v413_v12 = vld [vmem:[%s3468_s4 + $0x50] sm:$0xff] }
  0x1a   : > { %2594 = vmatprep.subr.mxu0 %v2935_v2  ;;  %2605 = vmatprep.subr.mxu1 %v2935_v2  ;;  %s396_s24 = scalar_lea.vmem %s3479_s1, %s2461_s30  ;;  %v407_v8 = vld [vmem:[%s3468_s4 + $0x20] sm:$0xff]  ;;  %v418_v11 = vld [vmem:[%s3468_s4 + $0x78] sm:$0xff]  ;;  %v417_v13 = vld [vmem:[%s3468_s4 + $0x70] sm:$0xff]  ;;  %s392_s27 = scalar_lea.vmem %s3480_s0, %s2461_s30 }
  0x1b   : > { %2595 = vmatpush3.msra.mxu0 %v405_v3  ;;  %2606 = vmatpush3.msra.mxu1 %v409_v4  ;;  %v3088_v9 = vld [vmem:[%s396_s24] sm:$0xff]  ;;  %v412_v14 = vld [vmem:[%s3468_s4 + $0x48] sm:$0xff]  ;;  %v734_v18 = vld [vmem:[%s3470_s6 + $0x18] sm:$0xff]  ;;  %s2370_s30 = scalar_lea.hbm %s3474_s10, %s2505_s28  ;;  %s2857_s0 = scalar_lea.vmem %s2373_s11, 128 }
  0x1c   : > { %2596 = vmatprep.subr.mxu0 %v2935_v2  ;;  %2607 = vmatprep.subr.mxu1 %v2935_v2  ;;  %v416_v15 = vld [vmem:[%s3468_s4 + $0x68] sm:$0xff]  ;;  %v411_v16 = vld [vmem:[%s3468_s4 + $0x40] sm:$0xff]  ;;  %v738_v19 = vld [vmem:[%s3470_s6 + $0x38] sm:$0xff]  ;;  %p2858_p12 = scmp.ne.s32.totalorder %s2373_s11, %s2857_s0  ;;  %s2937_s24 = smov [#allocation4]  }
  0x1d   : > { %2597 = vmatpush3.msra.mxu0 %v404_v5  ;;  %2608 = vmatpush3.msra.mxu1 %v408_v6  ;;  %v415_v17 = vld [vmem:[%s3468_s4 + $0x60] sm:$0xff]  ;;  %v733_v20 = vld [vmem:[%s3470_s6 + $0x10] sm:$0xff]  ;;  %v732_v22 = vld [vmem:[%s3470_s6 + $0x8] sm:$0xff]  ;;  %s2861_s16 = sshll.u32 %s2937_s24, 4  ;;  %s2862_s16 = int_to_ptr.vmem [resolvable:$false] %s2861_s16 }
  0x1e   : > { %2598 = vmatprep.subr.mxu0 %v2935_v2  ;;  %2609 = vmatprep.subr.mxu1 %v2935_v2  ;;  %v737_v21 = vld [vmem:[%s3470_s6 + $0x30] sm:$0xff]  ;;  %v736_v23 = vld [vmem:[%s3470_s6 + $0x28] sm:$0xff]  ;;  %v731_v24 = vld [vmem:[%s3470_s6] sm:$0xff]  ;;  %p2859_p13 = pnand %p2858_p12, %p3033_p4  ;;  %s2863_s20 = scalar_lea.vmem %s2862_s16, 256 }
  0x1f   : > { %2599 = vmatpush3.msra.mxu0 %v403_v7  ;;  %2600 = vmatprep.mubr.msk.f32.mxu0 %vm2936_vm1, %v2935_v2  ;;  %v735_v25 = vld [vmem:[%s3470_s6 + $0x20] sm:$0xff]  ;;  %v742_v26 = vld [vmem:[%s3470_s6 + $0x58] sm:$0xff]  ;;  %v741_v28 = vld [vmem:[%s3470_s6 + $0x50] sm:$0xff]  ;;  %p2864_p1 = scmp.lt.s32.totalorder %s2373_s11, %s2862_s16  ;;  %p2865_p2 = scmp.lt.s32.totalorder %s2863_s20, %s2857_s0 }
  0x20   : > { %2610 = vmatpush3.msra.mxu1 %v407_v8  ;;  %2601 = vmatmul.mubr.msk.f32.vlgmr.msra.gmra.mxu0 %vm447_vm0, %v3088_v9  ;;  %v746_v27 = vld [vmem:[%s3470_s6 + $0x78] sm:$0xff]  ;;  %v745_v29 = vld [vmem:[%s3470_s6 + $0x70] sm:$0xff]  ;;  %v740_v30 = vld [vmem:[%s3470_s6 + $0x48] sm:$0xff]  ;;  %p2860_p0 = pneg %p2859_p13 }
  0x21   : > { %2611 = vmatprep.mubr.msk.f32.mxu1 %vm2936_vm1, %v2935_v2  ;;  %2614 = vmatprep.subr.mxu0 %v2935_v2  ;;  %v744_v31 = vld [vmem:[%s3470_s6 + $0x68] sm:$0xff]  ;;  %v739_v32 = vld [vmem:[%s3470_s6 + $0x40] sm:$0xff]  ;;  %v1067_v34 = vld [vmem:[%s3466_s2 + $0x18] sm:$0xff]  ;;  %p2866_p3 = por %p2865_p2, %p2864_p1 }
  0x22   : > { %2625 = vmatprep.subr.mxu1 %v2935_v2  ;;  %2612 = vmatmul.mubr.msk.f32.vlgmr.msra.gmra.mxu1 %vm447_vm0, %v3088_v9  ;;  %v743_v33 = vld [vmem:[%s3470_s6 + $0x60] sm:$0xff]  ;;  %v1071_v35 = vld [vmem:[%s3466_s2 + $0x38] sm:$0xff]  ;;  %v1066_v36 = vld [vmem:[%s3466_s2 + $0x10] sm:$0xff] }
  0x23   : > { %2615 = vmatpush3.msra.mxu0 %v414_v10  ;;  %2626 = vmatpush3.msra.mxu1 %v418_v11  ;;  %v1070_v37 = vld [vmem:[%s3466_s2 + $0x30] sm:$0xff]  ;;  %v1065_v38 = vld [vmem:[%s3466_s2 + $0x8] sm:$0xff]  ;;  %v1064_v40 = vld [vmem:[%s3466_s2] sm:$0xff]  ;;  %p2867_p5 = pnand %p2866_p3, %p2860_p0 }
  0x24   : > { %2616 = vmatprep.subr.mxu0 %v2935_v2  ;;  %2627 = vmatprep.subr.mxu1 %v2935_v2  ;;  %v1069_v39 = vld [vmem:[%s3466_s2 + $0x28] sm:$0xff]  ;;  %v1068_v41 = vld [vmem:[%s3466_s2 + $0x20] sm:$0xff]  ;;  %v1075_v43 = vld [vmem:[%s3466_s2 + $0x58] sm:$0xff] }
  0x25   : > { %2617 = vmatpush3.msra.mxu0 %v413_v12  ;;  %2628 = vmatpush3.msra.mxu1 %v417_v13  ;;  %v397_v42 = vld [vmem:[%s392_s27] sm:$0xff]  ;;  %v1079_v44 = vld [vmem:[%s3466_s2 + $0x78] sm:$0xff]  ;;  %v1074_v45 = vld [vmem:[%s3466_s2 + $0x50] sm:$0xff] }
  0x26   : > { %2618 = vmatprep.subr.mxu0 %v2935_v2  ;;  %2629 = vmatprep.subr.mxu1 %v2935_v2  ;;  %v1078_v46 = vld [vmem:[%s3466_s2 + $0x70] sm:$0xff]  ;;  %v1073_v47 = vld [vmem:[%s3466_s2 + $0x48] sm:$0xff]  ;;  %v1072_v49 = vld [vmem:[%s3466_s2 + $0x40] sm:$0xff] }
  0x27   : > { %2619 = vmatpush3.msra.mxu0 %v412_v14  ;;  %2630 = vmatpush3.msra.mxu1 %v416_v15  ;;  %v1077_v48 = vld [vmem:[%s3466_s2 + $0x68] sm:$0xff]  ;;  %v1076_v50 = vld [vmem:[%s3466_s2 + $0x60] sm:$0xff] }
  0x28   : > { %2620 = vmatprep.subr.mxu0 %v2935_v2  ;;  %2631 = vmatprep.subr.mxu1 %v2935_v2  ;;  %v2463_v51 = vld [vmem:[%s3469_s5] ss:$0 sm:$0xff]  ;;  %v2464_v53 = vld [vmem:[%s3469_s5 + $0x1] ss:$0 sm:$0xff]  ;;  %v2465_v59 = vld [vmem:[%s3469_s5 + $0x2] ss:$0 sm:$0xff] }
  0x29   : > { %2621 = vmatpush3.msra.mxu0 %v411_v16  ;;  %2622 = vmatprep.mubr.msk.f32.mxu0 %vm2936_vm1, %v2935_v2  ;;  %v2466_v61 = vld [vmem:[%s3469_s5 + $0x3] ss:$0 sm:$0xff]  ;;  %v2471_v6 = vld [vmem:[%s3471_s7] ss:$0 sm:$0xff]  ;;  %v2472_v8 = vld [vmem:[%s3471_s7 + $0x1] ss:$0 sm:$0xff] }
  0x2a   : > { %2632 = vmatpush3.msra.mxu1 %v415_v17  ;;  %2623 = vmatmul.mubr.msk.f32.vlgmr.msra.gmra.mxu0 %vm447_vm0, %v3088_v9  ;;  %v2473_v14 = vld [vmem:[%s3471_s7 + $0x2] ss:$0 sm:$0xff]  ;;  %v2474_v16 = vld [vmem:[%s3471_s7 + $0x3] ss:$0 sm:$0xff] }
  0x2b   : > { %2633 = vmatprep.mubr.msk.f32.mxu1 %vm2936_vm1, %v2935_v2  ;;  %2636 = vmatprep.subr.mxu0 %v2935_v2 }
  0x2c   : > { %2647 = vmatprep.subr.mxu1 %v2935_v2  ;;  %2634 = vmatmul.mubr.msk.f32.vlgmr.msra.gmra.mxu1 %vm447_vm0, %v3088_v9 }
  0x2d   : > { %2637 = vmatpush3.msra.mxu0 %v734_v18  ;;  %2648 = vmatpush3.msra.mxu1 %v738_v19 }
  0x2e   : > { %2638 = vmatprep.subr.mxu0 %v2935_v2  ;;  %2649 = vmatprep.subr.mxu1 %v2935_v2 }
  0x2f   : > { %2639 = vmatpush3.msra.mxu0 %v733_v20  ;;  %2650 = vmatpush3.msra.mxu1 %v737_v21 }
  0x30   : > { %2640 = vmatprep.subr.mxu0 %v2935_v2  ;;  %2651 = vmatprep.subr.mxu1 %v2935_v2 }
  0x31   : > { %2641 = vmatpush3.msra.mxu0 %v732_v22  ;;  %2652 = vmatpush3.msra.mxu1 %v736_v23  ;;  %v2479_v22 = vld [vmem:[%s3467_s3] ss:$0 sm:$0xff]  ;;  %v2480_v23 = vld [vmem:[%s3467_s3 + $0x1] ss:$0 sm:$0xff] }
  0x32   : > { %2642 = vmatprep.subr.mxu0 %v2935_v2  ;;  %2653 = vmatprep.subr.mxu1 %v2935_v2 }
  0x33   : > { %2643 = vmatpush3.msra.mxu0 %v731_v24  ;;  %2644 = vmatprep.mubr.msk.f32.mxu0 %vm2936_vm1, %v2935_v2 }
  0x34   : > { %2654 = vmatpush3.msra.mxu1 %v735_v25  ;;  %2645 = vmatmul.mubr.msk.f32.vlgmr.msra.gmra.mxu0 %vm447_vm0, %v3088_v9 }
  0x35   : > { %2655 = vmatprep.mubr.msk.f32.mxu1 %vm2936_vm1, %v2935_v2  ;;  %2658 = vmatprep.subr.mxu0 %v2935_v2 }
  0x36   : > { %2669 = vmatprep.subr.mxu1 %v2935_v2  ;;  %2656 = vmatmul.mubr.msk.f32.vlgmr.msra.gmra.mxu1 %vm447_vm0, %v3088_v9 }
  0x37   : > { %2659 = vmatpush3.msra.mxu0 %v742_v26  ;;  %2670 = vmatpush3.msra.mxu1 %v746_v27 }
  0x38   : > { %2660 = vmatprep.subr.mxu0 %v2935_v2  ;;  %2671 = vmatprep.subr.mxu1 %v2935_v2 }
  0x39   : > { %2661 = vmatpush3.msra.mxu0 %v741_v28  ;;  %2672 = vmatpush3.msra.mxu1 %v745_v29 }
  0x3a   : > { %2662 = vmatprep.subr.mxu0 %v2935_v2  ;;  %2673 = vmatprep.subr.mxu1 %v2935_v2 }
  0x3b   : > { %2663 = vmatpush3.msra.mxu0 %v740_v30  ;;  %2674 = vmatpush3.msra.mxu1 %v744_v31 }
  0x3c   : > { %2664 = vmatprep.subr.mxu0 %v2935_v2  ;;  %2675 = vmatprep.subr.mxu1 %v2935_v2 }
  0x3d   : > { %2665 = vmatpush3.msra.mxu0 %v739_v32  ;;  %2666 = vmatprep.mubr.msk.f32.mxu0 %vm2936_vm1, %v2935_v2  ;;  %v2481_v32 = vld [vmem:[%s3467_s3 + $0x2] ss:$0 sm:$0xff] }
  0x3e   : > { %2676 = vmatpush3.msra.mxu1 %v743_v33  ;;  %2667 = vmatmul.mubr.msk.f32.vlgmr.msra.gmra.mxu0 %vm447_vm0, %v3088_v9  ;;  %v2482_v33 = vld [vmem:[%s3467_s3 + $0x3] ss:$0 sm:$0xff] }
  0x3f   : > { %2677 = vmatprep.mubr.msk.f32.mxu1 %vm2936_vm1, %v2935_v2  ;;  %2680 = vmatprep.subr.mxu0 %v2935_v2 }
  0x40   : > { %2691 = vmatprep.subr.mxu1 %v2935_v2  ;;  %2678 = vmatmul.mubr.msk.f32.vlgmr.msra.gmra.mxu1 %vm447_vm0, %v3088_v9 }
  0x41   : > { %2681 = vmatpush3.msra.mxu0 %v1067_v34  ;;  %2692 = vmatpush3.msra.mxu1 %v1071_v35 }
  0x42   : > { %2682 = vmatprep.subr.mxu0 %v2935_v2  ;;  %2693 = vmatprep.subr.mxu1 %v2935_v2 }
  0x43   : > { %2683 = vmatpush3.msra.mxu0 %v1066_v36  ;;  %2694 = vmatpush3.msra.mxu1 %v1070_v37 }
  0x44   : > { %2684 = vmatprep.subr.mxu0 %v2935_v2  ;;  %2695 = vmatprep.subr.mxu1 %v2935_v2 }
  0x45   : > { %2685 = vmatpush3.msra.mxu0 %v1065_v38  ;;  %2696 = vmatpush3.msra.mxu1 %v1069_v39 }
  0x46   : > { %2686 = vmatprep.subr.mxu0 %v2935_v2  ;;  %2697 = vmatprep.subr.mxu1 %v2935_v2 }
  0x47   : > { %2687 = vmatpush3.msra.mxu0 %v1064_v40  ;;  %2688 = vmatprep.mubr.msk.f32.mxu0 %vm2936_vm1, %v2935_v2 }
  0x48   : > { %2698 = vmatpush3.msra.mxu1 %v1068_v41  ;;  %2699 = vmatprep.mubr.msk.f32.mxu1 %vm2936_vm1, %v2935_v2 }
  0x49   : > { %2689 = vmatmul.mubr.msk.f32.vlgmr.msra.gmra.mxu0 %vm447_vm0, %v397_v42  ;;  %2700 = vmatmul.mubr.msk.f32.vlgmr.msra.gmra.mxu1 %vm447_vm0, %v397_v42 }
  0x4a   : > { %2702 = vmatprep.subr.mxu0 %v2935_v2  ;;  %2713 = vmatprep.subr.mxu1 %v2935_v2 }
  0x4b   : > { %2703 = vmatpush3.msra.mxu0 %v1075_v43  ;;  %2714 = vmatpush3.msra.mxu1 %v1079_v44 }
  0x4c   : > { %2704 = vmatprep.subr.mxu0 %v2935_v2  ;;  %2715 = vmatprep.subr.mxu1 %v2935_v2 }
  0x4d   : > { %2705 = vmatpush3.msra.mxu0 %v1074_v45  ;;  %2716 = vmatpush3.msra.mxu1 %v1078_v46 }
  0x4e   : > { %2706 = vmatprep.subr.mxu0 %v2935_v2  ;;  %2717 = vmatprep.subr.mxu1 %v2935_v2 }
  0x4f   : > { %2707 = vmatpush3.msra.mxu0 %v1073_v47  ;;  %2718 = vmatpush3.msra.mxu1 %v1077_v48 }
  0x50   : > { %2708 = vmatprep.subr.mxu0 %v2935_v2  ;;  %2719 = vmatprep.subr.mxu1 %v2935_v2 }
  0x51   : > { %2709 = vmatpush3.msra.mxu0 %v1072_v49  ;;  %2710 = vmatprep.mubr.msk.f32.mxu0 %vm2936_vm1, %v2935_v2 }
  0x52   : > { %2720 = vmatpush3.msra.mxu1 %v1076_v50  ;;  %2721 = vmatprep.mubr.msk.f32.mxu1 %vm2936_vm1, %v2935_v2 }
  0x53   : > { %2711 = vmatmul.mubr.msk.f32.vlgmr.msra.gmra.mxu0 %vm447_vm0, %v397_v42  ;;  %2722 = vmatmul.mubr.msk.f32.vlgmr.msra.gmra.mxu1 %vm447_vm0, %v397_v42 }
  0x54   : > { %2724 = vmatprep.subr.mxu0 %v2935_v2  ;;  %2729 = vmatprep.subr.mxu1 %v2935_v2 }
  0x55   : > { %2726 = vmatprep.mubr.msk.f32.mxu0 %vm2936_vm1, %v2935_v2  ;;  %2731 = vmatprep.mubr.msk.f32.mxu1 %vm2936_vm1, %v2935_v2 }
  0xe0   : > { %v517_v52 = vpop.f32.mrf.mxu0 }
  0xe1   : > { %v518_v54 = vadd.f32 %v2463_v51, %v517_v52 }
  0xe2   : > { %v2602_v55 = vpop.f32.mrf.mxu0  ;;  %v587_v56 = vpop.f32.mrf.mxu1 }
  0xe3   : > { %1056 = vst.msk [vmem:[#allocation2] sm:$0xff] %vm1055_vm2, %v518_v54  ;;  %v588_v57 = vadd.f32 %v2464_v53, %v587_v56 }
  0xe4   : > { %v2613_v58 = vpop.f32.mrf.mxu1 }
  0xe5   : > { %1057 = vst.msk [vmem:[#allocation2 + $0x8] sm:$0xff] %vm1055_vm2, %v588_v57 }
  0xea   : > { %v657_v60 = vpop.f32.mrf.mxu0  ;;  %v1392_v62 = vld [vmem:[#allocation2] sm:$0xff] }
  0xeb   : > { %v658_v63 = vadd.f32 %v2465_v59, %v657_v60  ;;  %2725 = vmatpush3.xpose.msk.msra.mxu0 %vm1055_vm2, %v1392_v62 }
  0xec   : > { %v2624_v0 = vpop.f32.mrf.mxu0  ;;  %v727_v1 = vpop.f32.mrf.mxu1  ;;  %v1393_v3 = vld [vmem:[#allocation2 + $0x8] sm:$0xff]  ;;  %2734 = vmatprep.subr.mxu0 %v2935_v2 }
  0xed   : > { %1058 = vst.msk [vmem:[#allocation2 + $0x10] sm:$0xff] %vm1055_vm2, %v658_v63  ;;  %v728_v4 = vadd.f32 %v2466_v61, %v727_v1  ;;  %2730 = vmatpush3.xpose.msk.msra.mxu1 %vm1055_vm2, %v1393_v3 }
  0xee   : > { %v2635_v5 = vpop.f32.mrf.mxu1  ;;  %2739 = vmatprep.subr.mxu1 %v2935_v2 }
  0xef   : > { %1059 = vst.msk [vmem:[#allocation2 + $0x18] sm:$0xff] %vm1055_vm2, %v728_v4 }
  0xf4   : > { %v841_v7 = vpop.f32.mrf.mxu0  ;;  %v1394_v30 = vld [vmem:[#allocation2 + $0x10] sm:$0xff] }
  0xf5   : > { %v842_v9 = vadd.f32 %v2471_v6, %v841_v7 }
  0xf6   : > { %v2646_v10 = vpop.f32.mrf.mxu0  ;;  %v911_v11 = vpop.f32.mrf.mxu1  ;;  %v1395_v31 = vld [vmem:[#allocation2 + $0x18] sm:$0xff] }
  0xf7   : > { %1060 = vst.msk [vmem:[#allocation3] sm:$0xff] %vm1055_vm2, %v842_v9  ;;  %v912_v12 = vadd.f32 %v2472_v8, %v911_v11 }
  0xf8   : > { %v2657_v13 = vpop.f32.mrf.mxu1 }
  0xf9   : > { %1061 = vst.msk [vmem:[#allocation3 + $0x8] sm:$0xff] %vm1055_vm2, %v912_v12 }
  0xfe   : > { %v981_v15 = vpop.f32.mrf.mxu0  ;;  %v1749_v40 = vld [vmem:[#allocation3] sm:$0xff] }
  0xff   : > { %v982_v17 = vadd.f32 %v2473_v14, %v981_v15 }
 0x100   : > { %v2668_v18 = vpop.f32.mrf.mxu0  ;;  %v1051_v19 = vpop.f32.mrf.mxu1  ;;  %v1750_v41 = vld [vmem:[#allocation3 + $0x8] sm:$0xff] }
 0x101   : > { %1062 = vst.msk [vmem:[#allocation3 + $0x10] sm:$0xff] %vm1055_vm2, %v982_v17  ;;  %v1052_v20 = vadd.f32 %v2474_v16, %v1051_v19 }
 0x102   : > { %v2679_v21 = vpop.f32.mrf.mxu1 }
 0x103   : > { %1063 = vst.msk [vmem:[#allocation3 + $0x18] sm:$0xff] %vm1055_vm2, %v1052_v20 }
 0x108   : > { %v1751_v21 = vld [vmem:[#allocation3 + $0x10] sm:$0xff] }
 0x109   : > { %v1178_v24 = vpop.f32.mrf.mxu0  ;;  %v1248_v25 = vpop.f32.mrf.mxu1 }
 0x10a   : > { %v1179_v26 = vadd.f32 %v2479_v22, %v1178_v24  ;;  %v1249_v27 = vadd.f32 %v2480_v23, %v1248_v25  ;;  %v1752_v24 = vld [vmem:[#allocation3 + $0x18] sm:$0xff] }
 0x10b   : > { %v2690_v28 = vpop.f32.mrf.mxu0  ;;  %v2701_v29 = vpop.f32.mrf.mxu1 }
 0x10c   : > { %2727 = vmatmul.mubr.msk.f32.vlgmr.msra.gmra.mxu0 %vm1055_vm2, %v1179_v26  ;;  %2732 = vmatmul.mubr.msk.f32.vlgmr.msra.gmra.mxu1 %vm1055_vm2, %v1249_v27  ;;  %v2045_v29 = vld [vmem:[%s3472_s8] sm:$0xff] }
 0x10d   : > { %2735 = vmatpush3.xpose.msk.msra.mxu0 %vm1055_vm2, %v1394_v30  ;;  %2740 = vmatpush3.xpose.msk.msra.mxu1 %vm1055_vm2, %v1395_v31  ;;  %v2046_v30 = vld [vmem:[%s3472_s8 + $0x8] sm:$0xff]  ;;  %v2047_v31 = vld [vmem:[%s3472_s8 + $0x10] sm:$0xff] }
 0x10e   : > { %2736 = vmatprep.mubr.msk.f32.mxu0 %vm2936_vm1, %v2935_v2  ;;  %2741 = vmatprep.mubr.msk.f32.mxu1 %vm2936_vm1, %v2935_v2 }
 0x10f   : > { %2744 = vmatprep.subr.mxu0 %v2935_v2  ;;  %2749 = vmatprep.subr.mxu1 %v2935_v2 }
 0x113   : > { %v1318_v34 = vpop.f32.mrf.mxu0  ;;  %v1388_v35 = vpop.f32.mrf.mxu1 }
 0x114   : > { %v1319_v36 = vadd.f32 %v2481_v32, %v1318_v34  ;;  %v1389_v37 = vadd.f32 %v2482_v33, %v1388_v35  ;;  %v2048_v34 = vld [vmem:[%s3472_s8 + $0x18] sm:$0xff] }
 0x115   : > { %v2712_v38 = vpop.f32.mrf.mxu0  ;;  %v2723_v39 = vpop.f32.mrf.mxu1 }
 0x116   : > { %2737 = vmatmul.mubr.msk.f32.vlgmr.msra.gmra.mxu0 %vm1055_vm2, %v1319_v36  ;;  %2742 = vmatmul.mubr.msk.f32.vlgmr.msra.gmra.mxu1 %vm1055_vm2, %v1389_v37 }
 0x117   : > { %2745 = vmatpush3.msra.mxu0 %v1749_v40  ;;  %2750 = vmatpush3.msra.mxu1 %v1750_v41 }
 0x118   : > { %2746 = vmatprep.mubr.msk.f32.mxu0 %vm2936_vm1, %v2935_v2  ;;  %2754 = vmatprep.subr.mxu0 %v2935_v2 }
 0x119   : > { %2751 = vmatprep.mubr.msk.f32.mxu1 %vm2936_vm1, %v2935_v2  ;;  %2759 = vmatprep.subr.mxu1 %v2935_v2 }
 0x1cc   : > { %v1469_v42 = vpop.f32.mrf.mxu0  ;;  %v1545_v43 = vpop.f32.mrf.mxu1 }
 0x1cd   : > { %v1701_v44 = vsel %vm1055_vm2, %v1469_v42, -inf  ;;  %v1704_v47 = vsel %vm1055_vm2, %v1545_v43, -inf }
 0x1ce   : > { %1702 = vmax.xlane.f32.xlu0 %v1701_v44  ;;  %v2728_v45 = vpop.f32.mrf.mxu0  ;;  %v2733_v46 = vpop.f32.mrf.mxu1 }
 0x1d2   : > { %1705 = vmax.xlane.f32.xlu0 %v1704_v47 }
 0x1d6   : > { %v1621_v48 = vpop.f32.mrf.mxu0  ;;  %v1697_v49 = vpop.f32.mrf.mxu1 }
 0x1d7   : > { %v1707_v50 = vsel %vm1055_vm2, %v1621_v48, -inf  ;;  %v1710_v53 = vsel %vm1055_vm2, %v1697_v49, -inf }
 0x1d8   : > { %1708 = vmax.xlane.f32.xlu1 %v1707_v50  ;;  %v2738_v51 = vpop.f32.mrf.mxu0  ;;  %v2743_v52 = vpop.f32.mrf.mxu1 }
 0x1dc   : > { %1711 = vmax.xlane.f32.xlu1 %v1710_v53  ;;  %v2503_v53 = vld [vmem:[%s3473_s9] ss:$0 sm:$0xff] }
 0x257   : > { %v1703_v54 = vpop.xlane.xlu0 %1702 }
 0x258   : > { %v1713_v55 = vsub.f32 %v1469_v42, %v1703_v54 }
 0x25a   : > { %v1717_v56 = vmul.f32 1.442695, %v1713_v55 }
 0x25b   : > { %v1706_v57 = vpop.xlane.xlu0 %1705 }
 0x25c   : > { %2841 = vpow2.f32 %v1717_v56  ;;  %v1714_v58 = vsub.f32 %v1545_v43, %v1706_v57 }
 0x25e   : > { %v1719_v59 = vmul.f32 1.442695, %v1714_v58 }
 0x260   : > { %2843 = vpow2.f32 %v1719_v59 }
 0x261   : > { %v1709_v60 = vpop.xlane.xlu1 %1708 }
 0x262   : > { %v1715_v61 = vsub.f32 %v1621_v48, %v1709_v60 }
 0x264   : > { %v1721_v62 = vmul.f32 1.442695, %v1715_v61 }
 0x265   : > { %v1712_v63 = vpop.xlane.xlu1 %1711 }
 0x266   : > { %2845 = vpow2.f32 %v1721_v62  ;;  %v1716_v0 = vsub.f32 %v1697_v49, %v1712_v63 }
 0x268   : > { %v1723_v1 = vmul.f32 1.442695, %v1716_v0 }
 0x269   : > { %v2842_v3 = vpop.eup %2841 }
 0x26a   : > { %2847 = vpow2.f32 %v1723_v1  ;;  %v1725_v4 = vsel %vm1055_vm2, %v2842_v3, 0.0 }
 0x26b   : > { %1726 = vadd.xlane.f32.xlu0 %v1725_v4 }
 0x26d   : > { %v2844_v5 = vpop.eup %2843 }
 0x26e   : > { %v1728_v6 = vsel %vm1055_vm2, %v2844_v5, 0.0 }
 0x26f   : > { %1729 = vadd.xlane.f32.xlu1 %v1728_v6 }
 0x273   : > { %v2846_v7 = vpop.eup %2845 }
 0x274   : > { %v1731_v8 = vsel %vm1055_vm2, %v2846_v7, 0.0 }
 0x275   : > { %1732 = vadd.xlane.f32.xlu0 %v1731_v8 }
 0x277   : > { %v2848_v9 = vpop.eup %2847 }
 0x278   : > { %v1734_v10 = vsel %vm1055_vm2, %v2848_v9, 0.0 }
 0x279   : > { %1735 = vadd.xlane.f32.xlu1 %v1734_v10 }
 0x2f4   : > { %v1727_v11 = vpop.xlane.xlu0 %1726 }
 0x2f5   : > { %v1737_v12 = vmul.f32 5.656854, %v1727_v11 }
 0x2f7   : > { %2849 = vrcp.f32 %v1737_v12 }
 0x2f8   : > { %v1730_v13 = vpop.xlane.xlu1 %1729 }
 0x2f9   : > { %v1738_v14 = vmul.f32 5.656854, %v1730_v13 }
 0x2fb   : > { %2851 = vrcp.f32 %v1738_v14 }
 0x2fe   : > { %v1733_v15 = vpop.xlane.xlu0 %1732 }
 0x2ff   : > { %v1739_v16 = vmul.f32 5.656854, %v1733_v15 }
 0x301   : > { %2853 = vrcp.f32 %v1739_v16 }
 0x302   : > { %v1736_v17 = vpop.xlane.xlu1 %1735 }
 0x303   : > { %v1740_v18 = vmul.f32 5.656854, %v1736_v17 }
 0x304   : > { %v2850_v19 = vpop.eup %2849 }
 0x305   : > { %2855 = vrcp.f32 %v1740_v18  ;;  %v1745_v20 = vmul.f32 %v2850_v19, %v2842_v3 }
 0x307   : > { %2747 = vmatmul.mubr.msk.f32.vlgmr.msra.gmra.mxu0 %vm1055_vm2, %v1745_v20 }
 0x308   : > { %v2852_v22 = vpop.eup %2851  ;;  %2755 = vmatpush3.msra.mxu0 %v1751_v21  ;;  %2756 = vmatprep.mubr.msk.f32.mxu0 %vm2936_vm1, %v2935_v2 }
 0x309   : > { %v1746_v23 = vmul.f32 %v2852_v22, %v2844_v5  ;;  %2764 = vmatprep.subr.mxu0 %v2935_v2 }
 0x30b   : > { %2752 = vmatmul.mubr.msk.f32.vlgmr.msra.gmra.mxu1 %vm1055_vm2, %v1746_v23 }
 0x30c   : > { %2760 = vmatpush3.msra.mxu1 %v1752_v24  ;;  %2761 = vmatprep.mubr.msk.f32.mxu1 %vm2936_vm1, %v2935_v2 }
 0x30d   : > { %2769 = vmatprep.subr.mxu1 %v2935_v2 }
 0x30e   : > { %v2854_v25 = vpop.eup %2853 }
 0x30f   : > { %v1747_v26 = vmul.f32 %v2854_v25, %v2846_v7 }
 0x311   : > { %2757 = vmatmul.mubr.msk.f32.vlgmr.msra.gmra.mxu0 %vm1055_vm2, %v1747_v26 }
 0x312   : > { %v2856_v27 = vpop.eup %2855  ;;  %2766 = vmatprep.mubr.msk.f32.mxu0 %vm2936_vm1, %v2935_v2  ;;  %2765 = vmatpush3.msra.mxu0 %v2045_v29 }
 0x313   : > { %v1748_v28 = vmul.f32 %v2856_v27, %v2848_v9  ;;  %2774 = vmatprep.subr.mxu0 %v2935_v2 }
 0x315   : > { %2762 = vmatmul.mubr.msk.f32.vlgmr.msra.gmra.mxu1 %vm1055_vm2, %v1748_v28 }
 0x316   : > { %2771 = vmatprep.mubr.msk.f32.mxu1 %vm2936_vm1, %v2935_v2  ;;  %2770 = vmatpush3.msra.mxu1 %v2046_v30 }
 0x317   : > { %2779 = vmatprep.subr.mxu1 %v2935_v2 }
 0x3c7   : > { %v1822_v32 = vpop.f32.mrf.mxu0 }
 0x3c8   : > { %2767 = vmatmul.mubr.msk.f32.vlgmr.msra.gmra.mxu0 %vm1055_vm2, %v1822_v32 }
 0x3c9   : > { %v2748_v33 = vpop.f32.mrf.mxu0  ;;  %2775 = vmatpush3.msra.mxu0 %v2047_v31  ;;  %2776 = vmatprep.mubr.msk.f32.mxu0 %vm2936_vm1, %v2935_v2 }
 0x3cb   : > { %v1895_v35 = vpop.f32.mrf.mxu1 }
 0x3cc   : > { %2772 = vmatmul.mubr.msk.f32.vlgmr.msra.gmra.mxu1 %vm1055_vm2, %v1895_v35 }
 0x3cd   : > { %v2753_v36 = vpop.f32.mrf.mxu1  ;;  %2780 = vmatpush3.msra.mxu1 %v2048_v34  ;;  %2781 = vmatprep.mubr.msk.f32.mxu1 %vm2936_vm1, %v2935_v2 }
 0x3d1   : > { %v1968_v37 = vpop.f32.mrf.mxu0 }
 0x3d2   : > { %2777 = vmatmul.mubr.msk.f32.vlgmr.msra.gmra.mxu0 %vm1055_vm2, %v1968_v37 }
 0x3d3   : > { %v2758_v38 = vpop.f32.mrf.mxu0 }
 0x3d5   : > { %v2041_v39 = vpop.f32.mrf.mxu1 }
 0x3d6   : > { %2782 = vmatmul.mubr.msk.f32.vlgmr.msra.gmra.mxu1 %vm1055_vm2, %v2041_v39 }
 0x3d7   : > { %v2763_v40 = vpop.f32.mrf.mxu1 }
 0x488   : > { %v2118_v41 = vpop.f32.mrf.mxu0 }
 0x489   : > { %v2341_v2 = vsel %vm447_vm0, %v2118_v41, 0.0 }
 0x48a   : > { %v2768_v42 = vpop.f32.mrf.mxu0 }
 0x48c   : > { %v2191_v43 = vpop.f32.mrf.mxu1 }
 0x48d   : > { %v2342_v45 = vsel %vm447_vm0, %v2191_v43, 0.0 }
 0x48e   : > { %v2773_v44 = vpop.f32.mrf.mxu1  ;;  %v2343_v48 = vadd.f32 %v2342_v45, %v2341_v2 }
 0x492   : > { %v2264_v46 = vpop.f32.mrf.mxu0 }
 0x493   : > { %v2344_v47 = vsel %vm447_vm0, %v2264_v46, 0.0 }
 0x494   : > { %v2778_v49 = vpop.f32.mrf.mxu0  ;;  %v2345_v50 = vadd.f32 %v2344_v47, %v2343_v48 }
 0x496   : > { %v2337_v51 = vpop.f32.mrf.mxu1 }
 0x497   : > { %v2346_v52 = vsel %vm447_vm0, %v2337_v51, 0.0 }
 0x498   : > { %v2347_v54 = vadd.f32 %v2346_v52, %v2345_v50  ;;  %v2783_v55 = vpop.f32.mrf.mxu1 }
 0x49a   : > { %v2355_v56 = vadd.f32 %v2503_v53, %v2347_v54 }
 0x49c   : > { %2356 = vst.msk [vmem:[%s385_s29] sm:$0xff] %vm447_vm0, %v2355_v56 }
 0x49d   : > { %2870 = shalt.err (!%p2867_p5)
}
 0x49e   : > { %s2871_s27 = scalar_lea.hbm %s2370_s30, 128  ;;  %s2875_s29 = scalar_lea.hbm %s3474_s10, 256 }
 0x49f   : > { %p2872_p6 = scmp.ne.s32.totalorder %s2370_s30, %s2871_s27  ;;  %p2876_p10 = scmp.lt.s32.totalorder %s2370_s30, %s3474_s10 }
 0x4a0   : > { %p2877_p11 = scmp.lt.s32.totalorder %s2875_s29, %s2871_s27 }
 0x4a1   : > { %p2873_p7 = pnand %p2872_p6, %p3033_p4 }
 0x4a2   : > { %p2878_p12 = por %p2877_p11, %p2876_p10 }
 0x4a3   : > { %p2874_p9 = pneg %p2873_p7 }
 0x4a5   : > { %p2879_p13 = pnand %p2878_p12, %p2874_p9 }
 0x4a7   : > { %2882 = shalt.err (!%p2879_p13)
}
 0x4a8   : > { %2784 = dma.vmem_to_hbm [thread:$0]  (%p3033_p4), %s2373_s11, 128, %s2370_s30, %s2358_s12  }
 0x4a9 PF: > { %p2790_p0 = scmp.ge.s32.totalorder %s2933_s18, 2  ;;  %s2384_s0 = sand.u32 1, %s2913_s13  }
 0x4aa   : > { %s2385_s24 = scalar_lea.sflag [#allocation5], %s2384_s0 }
 0x4ab   : > { %p2787_p1 = pnand %p2790_p0, %p3040_p8 }
 0x4ad   : > { %p2788_p2 = pneg %p2787_p1 }
 0x4af   : > { %2908 = dma.done.wait (%p2788_p2), %s2385_s24, 128  }
 0x4b0   : > { %2910 = vsyncadd (%p2788_p2), %s2385_s24, 4294967168  ;;  %s23_s18 = sadd.s32 1, %s2933_s18   ;;  %s3481_s13 = smov %s2917_s14 }
 0x4b1   : > { %p20_p3 = scmp.ge.s32.totalorder %s23_s18, 4   ;;  %s3482_s14 = smov %s2921_s15 }
 0x4b2   : > { %s3483_s15 = smov %s3046_s26  ;;  %s3484_s16 = smov %s2929_s17 }
 0x4b3   : > { %s3485_s17 = smov %s3487_s21  ;;  %22 = sbr.rel (!%p20_p3) target bundleno = 7 (0x7), region = 102 }
 0x4b8   :  { %2390 = vsyncpa [#allocation5], 1 }
 0x4b9   :  { %2392 = vsyncpa [#allocation5 + $0x1], 1 }

</bundles_post_ra>
